<compile_context>
chip_gen: v5e
topology: v5e:2x2
jax: 0.10.0
libtpu: 0.0.40
codegen_flags: <defaults>
</compile_context>

<pallas_src>
import functools

import jax
import jax.numpy as jnp
import numpy as np
from jax.experimental import pallas as pl
from jax.experimental.pallas import tpu as pltpu


def _round_up(x, m):
    return (x + m - 1) // m * m


# --------------------------------------------------------------------------
# Kernel: scaled similarity logits
#   out = (normalize(emb) @ txt_emb.T) / temperature
# emb_ref: (tm, D)  row tile of the flattened (B*Q, D) embeddings
# txt_ref: (D, tn)  pre-transposed, lane-padded text embeddings (bf16)
# out_ref: (tm, tn) f32 scaled logits
# --------------------------------------------------------------------------
def _sim_logits_kernel(emb_ref, txt_ref, out_ref, *, inv_temp):
    x = emb_ref[...].astype(jnp.float32)                     # (tm, D)
    sq = jnp.sum(x * x, axis=-1, keepdims=True)              # (tm, 1)
    # F.normalize semantics: x / max(||x||, 1e-12) == x * rsqrt(max(||x||^2, 1e-24))
    # 1/temperature is folded into the per-row scale: O(rows) work (EUP rsqrt)
    # instead of an O(rows*C) post-matmul multiply.
    scale = inv_temp * jax.lax.rsqrt(jnp.maximum(sq, 1e-24))
    xn = (x * scale).astype(jnp.bfloat16)                    # bf16 MXU feed
    out_ref[...] = jnp.dot(xn, txt_ref[...],
                           preferred_element_type=jnp.float32)


# --------------------------------------------------------------------------
# Per-model constant operand (hoisted out of the per-call wrapper).
# --------------------------------------------------------------------------
def prepare_txt_operand(txt_emb):
    """(C, D) text embeddings -> ((D, Cp) bf16 lane-padded transpose, C)."""
    C, _ = txt_emb.shape
    Cp = _round_up(C, 128)
    txt_t = txt_emb.astype(jnp.float32).T                    # (D, C)
    if Cp != C:
        txt_t = jnp.pad(txt_t, ((0, 0), (0, Cp - C)))        # zero cols, sliced off later
    return txt_t.astype(jnp.bfloat16), C


# --------------------------------------------------------------------------
# Tiling: fit a conservative VMEM budget on every generation.
# --------------------------------------------------------------------------
def _pick_tiles(rows, D, C):
    emb_b, txt_b, out_b = 4, 2, 4          # f32 rows in, bf16 txt, f32 logits out
    limit = 12 << 20                        # safe under v5e's 16 MiB scoped default
    if rows <= 512:
        # Single row step: the grid is a serial loop on 1-TC chips (v5e/v6e);
        # splitting tiny inputs only adds ~0.35 us/step + DMA setup.
        tm = max(8, _round_up(rows, 8))
    elif rows >= 2048:
        tm = 512                            # big tiles amortize per-step overhead
    else:
        tm = 256
    cp_full = _round_up(C, 128)
    cand = [cp_full] + [t for t in (4096, 2048, 1024, 512, 256, 128) if t < cp_full]
    for tn in cand:
        txt_bufs = 1 if tn == cp_full else 2
        need = 2 * tm * D * emb_b + txt_bufs * D * tn * txt_b + 2 * tm * tn * out_b
        if need <= limit:
            return tm, tn
    # Last resort: shrink the row tile.
    tn = 128
    while tm > 8 and (2 * tm * D * emb_b + 2 * D * tn * txt_b + 2 * tm * tn * out_b) > limit:
        tm = max(8, tm // 2)
    return tm, tn


def _sim_logits_pallas(emb_p, txt_p, tm, tn, inv_temp):
    rows_p, D = emb_p.shape
    _, Cp = txt_p.shape
    grid = (rows_p // tm, Cp // tn)
    kernel = functools.partial(_sim_logits_kernel, inv_temp=inv_temp)

    def call(txt_spec):
        return pl.pallas_call(
            kernel,
            out_shape=jax.ShapeDtypeStruct((rows_p, Cp), jnp.float32),
            grid_spec=pltpu.PrefetchScalarGridSpec(
                num_scalar_prefetch=0,
                grid=grid,
                in_specs=[pl.BlockSpec((tm, D), lambda i, j: (i, 0)),
                          txt_spec],
                out_specs=pl.BlockSpec((tm, tn), lambda i, j: (i, j)),
            ),
            compiler_params=pltpu.CompilerParams(
                dimension_semantics=("parallel", "parallel")),
        )(emb_p, txt_p)

    if grid[1] == 1:
        # Grid-invariant txt operand: single-buffer it (the default second
        # pipeline buffer is pure VMEM waste).  Conservative guard keeps the
        # script running if this Pallas build rejects Buffered(1).
        try:
            return call(pl.BlockSpec((D, tn), lambda i, j: (0, j),
                                     pipeline_mode=pl.Buffered(1)))
        except Exception:
            pass
    return call(pl.BlockSpec((D, tn), lambda i, j: (0, j)))


def sim_logits(emb_2d, txt_prepared, temperature, use_pallas=None):
    """Scaled logits normalize(emb) @ txt.T / temperature  -> (rows, C) f32."""
    txt_t, C = txt_prepared
    rows, D = emb_2d.shape
    assert txt_t.shape[0] == D
    inv_temp = float(1.0 / temperature)

    if use_pallas is None:
        use_pallas = rows >= 128            # small-problem fallback: setup cost dominates
    if not use_pallas:
        x = emb_2d.astype(jnp.float32)
        scale = inv_temp * jax.lax.rsqrt(
            jnp.maximum(jnp.sum(x * x, axis=-1, keepdims=True), 1e-24))
        xn = (x * scale).astype(jnp.bfloat16)
        return jnp.dot(xn, txt_t, preferred_element_type=jnp.float32)[:, :C]

    tm, tn = _pick_tiles(rows, D, C)
    Cp = _round_up(C, tn)
    if Cp != txt_t.shape[1]:                # re-pad to the class-tile width
        txt_t = jnp.pad(txt_t, ((0, 0), (0, Cp - txt_t.shape[1])))
    rows_p = _round_up(rows, tm)
    if rows_p != rows:
        emb_2d = jnp.pad(emb_2d, ((0, rows_p - rows), (0, 0)))
    logits_p = _sim_logits_pallas(emb_2d, txt_t, tm, tn, inv_temp)
    # Slice away padded rows/classes before any further work: no -inf mask
    # pass, and top_k sorts Q*C instead of Q*Cp entries.
    return logits_p[:rows, :C]


# --------------------------------------------------------------------------
# Full PostProcessSIM.forward equivalent
# --------------------------------------------------------------------------
def post_process_sim(pred_embed, pred_boxes, target_sizes, txt_emb, idx2label,
                     temperature=0.07, num_select=100, use_pallas=None,
                     return_sim_prob=False, txt_prepared=None):
    B, Q, D = pred_embed.shape
    assert pred_boxes.shape[0] == B and pred_boxes.shape[1] == Q
    assert target_sizes.shape == (B, 2)
    if txt_prepared is None:
        txt_prepared = prepare_txt_operand(txt_emb)
    C = txt_prepared[1]
    assert num_select <= Q * C, "num_select must not exceed queries * classes"

    logits = sim_logits(pred_embed.reshape(B * Q, D), txt_prepared,
                        temperature, use_pallas=use_pallas).reshape(B, Q, C)

    # top_k on scaled logits == top_k on sigmoid(scaled logits) (strictly
    # increasing); sigmoid is applied to the k winners only.
    topk_logits, topk_idx = jax.lax.top_k(logits.reshape(B, Q * C), num_select)
    scores = jax.nn.sigmoid(topk_logits)
    topk_boxes = topk_idx // C
    labels = idx2label[topk_idx % C]

    # Gather the k winning boxes, then cxcywh->xyxy + per-image scale in plain
    # JAX (k boxes only; a Pallas kernel over all Q boxes was pure overhead).
    boxes_k = jnp.take_along_axis(pred_boxes.astype(jnp.float32),
                                  topk_boxes[..., None], axis=1)      # (B, k, 4)
    cx, cy, w, h = jnp.split(boxes_k, 4, axis=-1)
    xyxy = jnp.concatenate([cx - 0.5 * w, cy - 0.5 * h,
                            cx + 0.5 * w, cy + 0.5 * h], axis=-1)
    img_h = target_sizes[:, 0].astype(jnp.float32)
    img_w = target_sizes[:, 1].astype(jnp.float32)
    scale_fct = jnp.stack([img_w, img_h, img_w, img_h], axis=1)        # (B, 4)
    boxes = xyxy * scale_fct[:, None, :]

    if return_sim_prob:
        return scores, labels, boxes, jax.nn.sigmoid(logits)
    return scores, labels, boxes


# --------------------------------------------------------------------------
# Pure-JAX reference (PyTorch-module semantics).  matmul_dtype=bf16 mirrors
# the kernel's MXU feed for exact structural checks; f32 checks the module's
# original numerics (loose tolerance: deliberate bf16 trade-off).
# --------------------------------------------------------------------------
def post_process_sim_ref(pred_embed, pred_boxes, target_sizes, txt_emb, idx2label,
                         temperature=0.07, num_select=100,
                         matmul_dtype=jnp.float32):
    B, Q, D = pred_embed.shape
    C = txt_emb.shape[0]
    x = pred_embed.reshape(B * Q, D).astype(jnp.float32)
    scale = (1.0 / temperature) * jax.lax.rsqrt(
        jnp.maximum(jnp.sum(x * x, axis=-1, keepdims=True), 1e-24))
    xn = (x * scale).astype(matmul_dtype)
    logits = jnp.dot(xn, txt_emb.astype(matmul_dtype).T,
                     preferred_element_type=jnp.float32)
    sim_prob = jax.nn.sigmoid(logits).reshape(B, Q, C)

    topk_logits, topk_idx = jax.lax.top_k(logits.reshape(B, Q * C), num_select)
    scores = jax.nn.sigmoid(topk_logits)
    topk_boxes = topk_idx // C
    labels = idx2label[topk_idx % C]

    cx, cy, w, h = [pred_boxes[..., i] for i in range(4)]
    xyxy = jnp.stack([cx - 0.5 * w, cy - 0.5 * h,
                      cx + 0.5 * w, cy + 0.5 * h], axis=-1)
    img_h, img_w = target_sizes[:, 0], target_sizes[:, 1]
    scale_fct = jnp.stack([img_w, img_h, img_w, img_h], axis=1)
    xyxy = xyxy * scale_fct[:, None, :]
    boxes = jnp.take_along_axis(xyxy, topk_boxes[..., None], axis=1)
    return scores, labels, boxes, sim_prob


if __name__ == "__main__":
    # Small shapes consistent with the module: batch=2, queries=64, emb dim=32,
    # 16 text classes.  num_select (COCO mode = 100) must be <= Q*C = 1024.
    B, Q, D, C = 2, 64, 32, 16
    NUM_SELECT = 100
    TEMPERATURE = 0.07

    key = jax.random.PRNGKey(0)
    k1, k2, k3 = jax.random.split(key, 3)

    pred_embed = jax.random.normal(k1, (B, Q, D), dtype=jnp.float32)
    pred_boxes = jax.random.uniform(k2, (B, Q, 4), dtype=jnp.float32,
                                    minval=0.1, maxval=0.5)          # cxcywh
    txt_emb = jax.random.normal(k3, (C, D), dtype=jnp.float32)
    txt_emb = txt_emb / jnp.linalg.norm(txt_emb, axis=-1, keepdims=True)
    idx2label = jnp.arange(1, C + 1, dtype=jnp.int32)
    target_sizes = jnp.array([[480.0, 640.0], [600.0, 800.0]], dtype=jnp.float32)

    # Hoisted per-model constant operand (transpose + pad + bf16 once).
    txt_prepared = prepare_txt_operand(txt_emb)

    scores, labels, boxes, sim_prob = post_process_sim(
        pred_embed, pred_boxes, target_sizes, txt_emb, idx2label,
        temperature=TEMPERATURE, num_select=NUM_SELECT,
        use_pallas=True, return_sim_prob=True, txt_prepared=txt_prepared)
    jax.block_until_ready((scores, labels, boxes, sim_prob))

    # ---- bf16-precision reference (mirrors the kernel's MXU feed) ----------
    r_scores, r_labels, r_boxes, r_sim_prob = post_process_sim_ref(
        pred_embed, pred_boxes, target_sizes, txt_emb, idx2label,
        temperature=TEMPERATURE, num_select=NUM_SELECT, matmul_dtype=jnp.bfloat16)

    np.testing.assert_allclose(np.asarray(sim_prob), np.asarray(r_sim_prob),
                               rtol=0, atol=1e-4)
    np.testing.assert_allclose(np.asarray(scores), np.asarray(r_scores),
                               rtol=0, atol=1e-4)

    labels_np, r_labels_np = np.asarray(labels), np.asarray(r_labels)
    boxes_np, r_boxes_np = np.asarray(boxes), np.asarray(r_boxes)
    mism = (labels_np != r_labels_np) | ~np.isclose(
        boxes_np, r_boxes_np, rtol=1e-5, atol=1e-3).all(axis=-1)
    if mism.any():
        # Near-tie reorderings (different f32 accumulation order) are allowed,
        # but only where the selected scores are (near-)identical and rare.
        assert mism.mean() < 0.05, "too many top-k mismatches vs bf16 reference"
        np.testing.assert_allclose(np.asarray(scores)[mism],
                                   np.asarray(r_scores)[mism], rtol=0, atol=1e-4)
    np.testing.assert_array_equal(labels_np[~mism], r_labels_np[~mism])
    np.testing.assert_allclose(boxes_np[~mism], r_boxes_np[~mism],
                               rtol=1e-5, atol=1e-3)

    # ---- f32 module-semantics reference (loose: bf16 MXU trade-off) --------
    f_scores, _, _, f_sim_prob = post_process_sim_ref(
        pred_embed, pred_boxes, target_sizes, txt_emb, idx2label,
        temperature=TEMPERATURE, num_select=NUM_SELECT, matmul_dtype=jnp.float32)
    np.testing.assert_allclose(np.asarray(sim_prob), np.asarray(f_sim_prob),
                               rtol=0, atol=2e-2)
    np.testing.assert_allclose(np.asarray(scores), np.asarray(f_scores),
                               rtol=0, atol=2e-2)

    # results list-of-dicts (same structure as the PyTorch module's output)
    results = [{"scores": scores[i], "labels": labels[i], "boxes": boxes[i]}
               for i in range(B)]
    assert len(results) == B

    print("KERNEL_OK")
</pallas_src>

<mosaic_0001>
module attributes {stable_mosaic.version = 11 : i64} {
  func.func @_sim_logits_kernel(%arg0: i32, %arg1: i32, %arg2: memref<128x32xf32, #tpu.memory_space<vmem>>, %arg3: memref<32x128xbf16, #tpu.memory_space<vmem>>, %arg4: memref<128x128xf32, #tpu.memory_space<vmem>>) attributes {dimension_semantics = [#tpu.dimension_semantics<parallel>, #tpu.dimension_semantics<parallel>], iteration_bounds = array<i64: 1, 1>, scalar_prefetch = 0 : i64, scratch_operands = 0 : i64, tpu.core_type = #tpu.core_type<tc>, window_params = [{transform_indices = @transform_0, window_bounds = array<i64: 128, 32>}, {pipeline_mode = #tpu.pipeline_mode<synchronous>, transform_indices = @transform_1, window_bounds = array<i64: 32, 128>}, {transform_indices = @transform_2, window_bounds = array<i64: 128, 128>}]} {
    %c0 = arith.constant 0 : index
    %c0_0 = arith.constant 0 : index
    %0 = vector.load %arg2[%c0, %c0_0] : memref<128x32xf32, #tpu.memory_space<vmem>>, vector<128x32xf32>
    %1 = arith.mulf %0, %0 : vector<128x32xf32>
    %cst = arith.constant dense<0.000000e+00> : vector<128xf32>
    %2 = vector.multi_reduction <add>, %1, %cst [1] : vector<128x32xf32> to vector<128xf32>
    %3 = vector.shape_cast %2 : vector<128xf32> to vector<128x1xf32>
    %cst_1 = arith.constant 1.000000e-24 : f32
    %4 = vector.broadcast %cst_1 : f32 to vector<128x1xf32>
    %5 = arith.maximumf %3, %4 : vector<128x1xf32>
    %6 = math.rsqrt %5 : vector<128x1xf32>
    %cst_2 = arith.constant 14.2857141 : f32
    %7 = vector.broadcast %cst_2 : f32 to vector<128x1xf32>
    %8 = arith.mulf %7, %6 : vector<128x1xf32>
    %9 = vector.broadcast %8 : vector<128x1xf32> to vector<128x32xf32>
    %10 = arith.mulf %0, %9 : vector<128x32xf32>
    %11 = arith.truncf %10 : vector<128x32xf32> to vector<128x32xbf16>
    %c0_3 = arith.constant 0 : index
    %c0_4 = arith.constant 0 : index
    %12 = vector.load %arg3[%c0_3, %c0_4] : memref<32x128xbf16, #tpu.memory_space<vmem>>, vector<32x128xbf16>
    %cst_5 = arith.constant dense<0.000000e+00> : vector<128x128xf32>
    %13 = tpu.matmul %11, %12, %cst_5 {dimension_numbers = #tpu.dot_dimension_numbers<[1], [0], [0], [1], [0, 0, 1, 1], [], []>} : vector<128x32xbf16>, vector<32x128xbf16>, vector<128x128xf32> -> vector<128x128xf32>
    %c0_6 = arith.constant 0 : index
    %c0_7 = arith.constant 0 : index
    %14 = vector.load %arg4[%c0_6, %c0_7] : memref<128x128xf32, #tpu.memory_space<vmem>>, vector<128x128xf32>
    tpu.vector_store %arg4[%c0_6, %c0_7], %13 {strides = array<i32>} : memref<128x128xf32, #tpu.memory_space<vmem>>, vector<128x128xf32>,
    return
  }
  func.func @transform_0(%arg0: i32, %arg1: i32) -> (i32, i32) {
    %c0_i32 = arith.constant 0 : i32
    %c0_i32_0 = arith.constant 0 : i32
    return %arg0, %c0_i32 : i32, i32
  }
  func.func @transform_1(%arg0: i32, %arg1: i32) -> (i32, i32) {
    %c0_i32 = arith.constant 0 : i32
    %c0_i32_0 = arith.constant 0 : i32
    return %c0_i32, %arg1 : i32, i32
  }
  func.func @transform_2(%arg0: i32, %arg1: i32) -> (i32, i32) {
    %c0_i32 = arith.constant 0 : i32
    return %arg0, %arg1 : i32, i32
  }
}

module attributes {stable_mosaic.version = 11 : i64} {
  func.func @_sim_logits_kernel(%arg0: i32, %arg1: i32, %arg2: memref<128x32xf32, #tpu.memory_space<vmem>>, %arg3: memref<32x128xbf16, #tpu.memory_space<vmem>>, %arg4: memref<128x128xf32, #tpu.memory_space<vmem>>) attributes {dimension_semantics = [#tpu.dimension_semantics<parallel>, #tpu.dimension_semantics<parallel>], iteration_bounds = array<i64: 1, 1>, scalar_prefetch = 0 : i64, scratch_operands = 0 : i64, tpu.core_type = #tpu.core_type<tc>, window_params = [{transform_indices = @transform_0, window_bounds = array<i64: 128, 32>}, {transform_indices = @transform_1, window_bounds = array<i64: 32, 128>}, {transform_indices = @transform_2, window_bounds = array<i64: 128, 128>}]} {
    %c0 = arith.constant 0 : index
    %c0_0 = arith.constant 0 : index
    %0 = vector.load %arg2[%c0, %c0_0] : memref<128x32xf32, #tpu.memory_space<vmem>>, vector<128x32xf32>
    %1 = arith.mulf %0, %0 : vector<128x32xf32>
    %cst = arith.constant dense<0.000000e+00> : vector<128xf32>
    %2 = vector.multi_reduction <add>, %1, %cst [1] : vector<128x32xf32> to vector<128xf32>
    %3 = vector.shape_cast %2 : vector<128xf32> to vector<128x1xf32>
    %cst_1 = arith.constant 1.000000e-24 : f32
    %4 = vector.broadcast %cst_1 : f32 to vector<128x1xf32>
    %5 = arith.maximumf %3, %4 : vector<128x1xf32>
    %6 = math.rsqrt %5 : vector<128x1xf32>
    %cst_2 = arith.constant 14.2857141 : f32
    %7 = vector.broadcast %cst_2 : f32 to vector<128x1xf32>
    %8 = arith.mulf %7, %6 : vector<128x1xf32>
    %9 = vector.broadcast %8 : vector<128x1xf32> to vector<128x32xf32>
    %10 = arith.mulf %0, %9 : vector<128x32xf32>
    %11 = arith.truncf %10 : vector<128x32xf32> to vector<128x32xbf16>
    %c0_3 = arith.constant 0 : index
    %c0_4 = arith.constant 0 : index
    %12 = vector.load %arg3[%c0_3, %c0_4] : memref<32x128xbf16, #tpu.memory_space<vmem>>, vector<32x128xbf16>
    %cst_5 = arith.constant dense<0.000000e+00> : vector<128x128xf32>
    %13 = tpu.matmul %11, %12, %cst_5 {dimension_numbers = #tpu.dot_dimension_numbers<[1], [0], [0], [1], [0, 0, 1, 1], [], []>} : vector<128x32xbf16>, vector<32x128xbf16>, vector<128x128xf32> -> vector<128x128xf32>
    %c0_6 = arith.constant 0 : index
    %c0_7 = arith.constant 0 : index
    %14 = vector.load %arg4[%c0_6, %c0_7] : memref<128x128xf32, #tpu.memory_space<vmem>>, vector<128x128xf32>
    tpu.vector_store %arg4[%c0_6, %c0_7], %13 {strides = array<i32>} : memref<128x128xf32, #tpu.memory_space<vmem>>, vector<128x128xf32>,
    return
  }
  func.func @transform_0(%arg0: i32, %arg1: i32) -> (i32, i32) {
    %c0_i32 = arith.constant 0 : i32
    %c0_i32_0 = arith.constant 0 : i32
    return %arg0, %c0_i32 : i32, i32
  }
  func.func @transform_1(%arg0: i32, %arg1: i32) -> (i32, i32) {
    %c0_i32 = arith.constant 0 : i32
    %c0_i32_0 = arith.constant 0 : i32
    return %c0_i32, %arg1 : i32, i32
  }
  func.func @transform_2(%arg0: i32, %arg1: i32) -> (i32, i32) {
    %c0_i32 = arith.constant 0 : i32
    return %arg0, %arg1 : i32, i32
  }
}

</mosaic_0001>

<bundles_post_ra>
// kernel: tpu_custom_call.1
= control target key start
LH: loop header
LB: loop body
LE: loop exit
PB: predicated region body
PF: predicated region fallthrough
CT: control target
= control target key end

     0   :  { %vm45_vm0 = vcmask 261120   ;;  %s993_s0 = inlined_call_operand.vmem [shape: f32[128,32], index: 0, kind: input, shape index: {}]   ;;  %s994_s1 = inlined_call_operand.vmem [shape: bf16[32,128], index: 1, kind: input, shape index: {}]   ;;  %s995_s2 = inlined_call_operand.hbm [shape: f32[128,128], index: 2, kind: output, shape index: {}]  }
   0x1   :  { %v539_v0 = vld [vmem:[%s993_s0 + $0x60] sm:$0xff]  ;;  %v560_v6 = vld [vmem:[%s993_s0 + $0x68] sm:$0xff] }
   0x2   :  { %v544_v1 = vld [vmem:[%s993_s0 + $0x40] sm:$0xff]  ;;  %v41_v3 = vmul.f32 %v539_v0, %v539_v0  ;;  %v565_v7 = vld [vmem:[%s993_s0 + $0x48] sm:$0xff]  ;;  %v42_v12 = vmul.f32 %v560_v6, %v560_v6 }
   0x3   :  { %v549_v2 = vld [vmem:[%s993_s0] sm:$0xff]  ;;  %v37_v4 = vmul.f32 %v544_v1, %v544_v1  ;;  %v573_v11 = vld [vmem:[%s993_s0 + $0x8] sm:$0xff]  ;;  %v38_v13 = vmul.f32 %v565_v7, %v565_v7 }
   0x4   :  { %v29_v5 = vmul.f32 %v549_v2, %v549_v2  ;;  %v82_v8 = vsel %vm45_vm0, %v41_v3, 0.0 }
   0x5   :  { %v70_v9 = vsel %vm45_vm0, %v37_v4, 0.0  ;;  %83 = vadd.xlane.f32.xlu1 %v82_v8 }
   0x6   :  { %v46_v10 = vsel %vm45_vm0, %v29_v5, 0.0  ;;  %71 = vadd.xlane.f32.xlu0 %v70_v9 }
   0x7   :  { %47 = vadd.xlane.f32.xlu2 %v46_v10 }
   0x8   :  { %7 = vsyncpa [#allocation3], 0  ;;  %v30_v14 = vmul.f32 %v573_v11, %v573_v11  ;;  %v85_v15 = vsel %vm45_vm0, %v42_v12, 0.0  ;;  %v73_v16 = vsel %vm45_vm0, %v38_v13, 0.0  ;;  %v587_v18 = vld [vmem:[%s993_s0 + $0x28] sm:$0xff]  ;;  %v592_v19 = vld [vmem:[%s993_s0 + $0x20] sm:$0xff] }
   0x9   :  { %v597_v20 = vld [vmem:[%s993_s0 + $0x50] sm:$0xff]  ;;  %v34_v21 = vmul.f32 %v587_v18, %v587_v18  ;;  %v33_v22 = vmul.f32 %v592_v19, %v592_v19  ;;  %v616_v28 = vld [vmem:[%s993_s0 + $0x58] sm:$0xff]  ;;  %v450_v48 = vld [vmem:[%s994_s1 + $0x8] sm:$0xff]  ;;  %s421_s19 = sshll.u32 %s995_s2, 4  ;;  %s519_s20 = smov 128   ;;  %s422_s19 = int_to_ptr.hbm [resolvable:$true] %s421_s19 }
   0xa   :  { %v49_v17 = vsel %vm45_vm0, %v30_v14, 0.0  ;;  %v39_v23 = vmul.f32 %v597_v20, %v597_v20  ;;  %v611_v27 = vld [vmem:[%s993_s0 + $0x70] sm:$0xff]  ;;  %v621_v29 = vld [vmem:[%s993_s0 + $0x78] sm:$0xff]  ;;  %v40_v31 = vmul.f32 %v616_v28, %v616_v28  ;;  %356 = vmatpush.bf16.msra.mxu0 %v450_v48  ;;  %452 = vmatpush.bf16.msra.mxu2 %v450_v48  ;;  %v449_v55 = vld [vmem:[%s994_s1] sm:$0xff]  ;;  %s518_s1 = smov [#allocation2]   ;;  %s520_s21 = smov 8  }
   0xb   :  { %v61_v24 = vsel %vm45_vm0, %v34_v21, 0.0  ;;  %v58_v25 = vsel %vm45_vm0, %v33_v22, 0.0  ;;  %v43_v30 = vmul.f32 %v611_v27, %v611_v27  ;;  %v44_v32 = vmul.f32 %v621_v29, %v621_v29  ;;  %v635_v36 = vld [vmem:[%s993_s0 + $0x18] sm:$0xff]  ;;  %v640_v37 = vld [vmem:[%s993_s0 + $0x10] sm:$0xff]  ;;  %453 = vmatpush.bf16.msra.mxu3 %v450_v48  ;;  %451 = vmatpush.bf16.msra.mxu1 %v450_v48  ;;  %s419_s16 = sshll.u32 %s518_s1, 4  ;;  %s420_s16 = int_to_ptr.vmem [resolvable:$true] %s419_s16 }
   0xc   :  { %v76_v26 = vsel %vm45_vm0, %v39_v23, 0.0  ;;  %v79_v34 = vsel %vm45_vm0, %v40_v31, 0.0  ;;  %v645_v38 = vld [vmem:[%s993_s0 + $0x30] sm:$0xff]  ;;  %v32_v39 = vmul.f32 %v635_v36, %v635_v36  ;;  %v31_v40 = vmul.f32 %v640_v37, %v640_v37  ;;  %v659_v45 = vld [vmem:[%s993_s0 + $0x38] sm:$0xff] }
   0xd   :  { %86 = vadd.xlane.f32.xlu1 %v85_v15  ;;  %v88_v33 = vsel %vm45_vm0, %v43_v30, 0.0  ;;  %v91_v35 = vsel %vm45_vm0, %v44_v32, 0.0  ;;  %v35_v41 = vmul.f32 %v645_v38, %v645_v38  ;;  %v36_v46 = vmul.f32 %v659_v45, %v659_v45 }
   0xe   :  { %74 = vadd.xlane.f32.xlu0 %v73_v16  ;;  %v55_v42 = vsel %vm45_vm0, %v32_v39, 0.0  ;;  %v52_v43 = vsel %vm45_vm0, %v31_v40, 0.0  ;;  %357 = vmatpush.bf16.msra.mxu0 %v449_v55 }
   0xf   :  { %50 = vadd.xlane.f32.xlu2 %v49_v17  ;;  %v64_v44 = vsel %vm45_vm0, %v35_v41, 0.0  ;;  %v67_v47 = vsel %vm45_vm0, %v36_v46, 0.0  ;;  %455 = vmatpush.bf16.msra.mxu2 %v449_v55 }
  0x10   :  { %456 = vmatpush.bf16.msra.mxu3 %v449_v55  ;;  %454 = vmatpush.bf16.msra.mxu1 %v449_v55 }
  0x15   :  { %62 = vadd.xlane.f32.xlu1 %v61_v24 }
  0x16   :  { %59 = vadd.xlane.f32.xlu0 %v58_v25 }
  0x17   :  { %77 = vadd.xlane.f32.xlu2 %v76_v26 }
  0x1d   :  { %89 = vadd.xlane.f32.xlu1 %v88_v33 }
  0x1e   :  { %80 = vadd.xlane.f32.xlu0 %v79_v34 }
  0x1f   :  { %92 = vadd.xlane.f32.xlu2 %v91_v35 }
  0x25   :  { %56 = vadd.xlane.f32.xlu1 %v55_v42 }
  0x26   :  { %53 = vadd.xlane.f32.xlu0 %v52_v43 }
  0x27   :  { %65 = vadd.xlane.f32.xlu2 %v64_v44 }
  0x2e   :  { %68 = vadd.xlane.f32.xlu0 %v67_v47 }
  0x78   :  { %v84_v49 = vpop.xlane.xlu1 %83 }
  0x79   :  { %v72_v50 = vpop.xlane.xlu0 %71  ;;  %v667_v51 = vmax.f32 %v84_v49, 1e-24 }
  0x7a   :  { %v669_v52 = vmax.f32 %v72_v50, 1e-24  ;;  %v48_v53 = vpop.xlane.xlu2 %47 }
  0x7b   :  { %v94_v54 = vmax.f32 %v48_v53, 1e-24  ;;  %460 = vrsqrt.f32 %v667_v51  ;;  %vm236_vm1 = vweird.f32 %v667_v51 }
  0x7c   :  { %462 = vrsqrt.f32 %v669_v52  ;;  %vm196_vm2 = vweird.f32 %v669_v52 }
  0x7d   :  { %464 = vrsqrt.f32 %v94_v54  ;;  %vm116_vm3 = vweird.f32 %v94_v54 }
  0x80   :  { %v87_v56 = vpop.xlane.xlu1 %86 }
  0x81   :  { %v75_v57 = vpop.xlane.xlu0 %74  ;;  %v676_v58 = vpop.eup %460  ;;  %v678_v59 = vmax.f32 %v87_v56, 1e-24 }
  0x82   :  { %v680_v60 = vmax.f32 %v75_v57, 1e-24  ;;  %v51_v61 = vpop.xlane.xlu2 %50  ;;  %v682_v62 = vpop.eup %462  ;;  %v231_v4 = vmul.f32 %v676_v58, %v667_v51  ;;  %vm237_vm5 = vweird.f32 %v676_v58 }
  0x83   :  { %v684_v63 = vmax.f32 %v51_v61, 1e-24  ;;  %v686_v3 = vpop.eup %464  ;;  %v191_v5 = vmul.f32 %v682_v62, %v669_v52  ;;  %466 = vrsqrt.f32 %v678_v59  ;;  %vm197_vm6 = vweird.f32 %v682_v62 }
  0x84   :  { %v111_v8 = vmul.f32 %v686_v3, %v94_v54  ;;  %468 = vrsqrt.f32 %v680_v60  ;;  %v232_v12 = vmul.f32 %v676_v58, %v231_v4  ;;  %vm117_vm4 = vweird.f32 %v686_v3  ;;  %vm758_vm11 = vmor %vm196_vm2, %vm197_vm6 }
  0x85   :  { %v192_v9 = vmul.f32 %v682_v62, %v191_v5  ;;  %470 = vrsqrt.f32 %v684_v63  ;;  %vm126_vm7 = vweird.f32 %v684_v63  ;;  %vm731_vm8 = vmor %vm116_vm3, %vm117_vm4  ;;  %vm206_vm12 = vweird.f32 %v680_v60 }
  0x86   :  { %v112_v10 = vmul.f32 %v686_v3, %v111_v8  ;;  %v233_v31 = vmul.f32 0.5, %v232_v12  ;;  %vm246_vm14 = vweird.f32 %v678_v59  ;;  %vm797_vm2 = vmor %vm236_vm1, %vm237_vm5 }
  0x87   :  { %v193_v13 = vmul.f32 0.5, %v192_v9 }
  0x88   :  { %v113_v14 = vmul.f32 0.5, %v112_v10  ;;  %v63_v15 = vpop.xlane.xlu1 %62  ;;  %v234_v43 = vsub.f32 1.5, %v233_v31 }
  0x89   :  { %v60_v16 = vpop.xlane.xlu0 %59  ;;  %v699_v17 = vpop.eup %466  ;;  %v701_v21 = vmax.f32 %v63_v15, 1e-24  ;;  %v194_v33 = vsub.f32 1.5, %v193_v13 }
  0x8a   :  { %v703_v22 = vmax.f32 %v60_v16, 1e-24  ;;  %v78_v23 = vpop.xlane.xlu2 %77  ;;  %v705_v24 = vpop.eup %468  ;;  %v114_v25 = vsub.f32 1.5, %v113_v14  ;;  %v241_v26 = vmul.f32 %v699_v17, %v678_v59  ;;  %v752_v10 = vmul.f32 %v676_v58, %v234_v43 }
  0x8b   :  { %v709_v30 = vpop.eup %470  ;;  %v201_v32 = vmul.f32 %v705_v24, %v680_v60  ;;  %472 = vrsqrt.f32 %v701_v21  ;;  %v725_v42 = vmax.f32 %v78_v23, 1e-24  ;;  %v195_v46 = vmul.f32 %v682_v62, %v194_v33 }
  0x8c   :  { %v121_v34 = vmul.f32 %v709_v30, %v684_v63  ;;  %v115_v35 = vmul.f32 %v686_v3, %v114_v25  ;;  %474 = vrsqrt.f32 %v703_v22  ;;  %v242_v40 = vmul.f32 %v699_v17, %v241_v26 }
  0x8d   :  { %v202_v39 = vmul.f32 %v705_v24, %v201_v32  ;;  %vm207_vm9 = vweird.f32 %v705_v24  ;;  %476 = vrsqrt.f32 %v725_v42  ;;  %vm127_vm10 = vweird.f32 %v709_v30 }
  0x8e   :  { %v122_v41 = vmul.f32 %v709_v30, %v121_v34  ;;  %v119_v54 = vsel %vm731_vm8, %v686_v3, %v115_v35  ;;  %v243_v4 = vmul.f32 0.5, %v242_v40  ;;  %vm767_vm13 = vmor %vm206_vm12, %vm207_vm9  ;;  %v199_v25 = vsel %vm758_vm11, %v682_v62, %v195_v46 }
  0x8f   :  { %v203_v44 = vmul.f32 0.5, %v202_v39  ;;  %v270_v16 = vmul.f32 14.285714, %v119_v54  ;;  %vm778_vm15 = vmor %vm126_vm7, %vm127_vm10  ;;  %vm247_vm3 = vweird.f32 %v699_v17  ;;  %v239_v51 = vsel %vm797_vm2, %v676_v58, %v752_v10 }
  0x90   :  { %v123_v48 = vmul.f32 0.5, %v122_v41  ;;  %v90_v49 = vpop.xlane.xlu1 %89  ;;  %v244_v32 = vsub.f32 1.5, %v243_v4  ;;  %v278_v43 = vmul.f32 14.285714, %v199_v25  ;;  %vm166_vm1 = vweird.f32 %v701_v21 }
  0x91   :  { %v81_v50 = vpop.xlane.xlu0 %80  ;;  %v737_v53 = vpop.eup %472  ;;  %v204_v55 = vsub.f32 1.5, %v203_v44  ;;  %v739_v56 = vmax.f32 %v90_v49, 1e-24  ;;  %vm156_vm4 = vweird.f32 %v703_v22  ;;  %vm216_vm7 = vweird.f32 %v725_v42 }
  0x92   :  { %v741_v57 = vmax.f32 %v81_v50, 1e-24  ;;  %v93_v61 = vpop.xlane.xlu2 %92  ;;  %v124_v5 = vsub.f32 1.5, %v123_v48  ;;  %v161_v8 = vmul.f32 %v737_v53, %v701_v21  ;;  %v749_v9 = vpop.eup %474  ;;  %v245_v58 = vmul.f32 %v699_v17, %v244_v32 }
  0x93   :  { %v205_v3 = vmul.f32 %v705_v24, %v204_v55  ;;  %478 = vrsqrt.f32 %v739_v56  ;;  %v151_v15 = vmul.f32 %v749_v9, %v703_v22  ;;  %v783_v23 = vmax.f32 %v93_v61, 1e-24  ;;  %v791_v31 = vpop.eup %476 }
  0x94   :  { %v125_v14 = vmul.f32 %v709_v30, %v124_v5  ;;  %v162_v52 = vmul.f32 %v737_v53, %v161_v8  ;;  %480 = vrsqrt.f32 %v741_v57  ;;  %vm167_vm5 = vweird.f32 %v737_v53 }
  0x95   :  { %v209_v26 = vsel %vm767_vm13, %v705_v24, %v205_v3  ;;  %v152_v34 = vmul.f32 %v749_v9, %v151_v15  ;;  %v211_v24 = vmul.f32 %v791_v31, %v725_v42  ;;  %482 = vrsqrt.f32 %v783_v23  ;;  %vm858_vm13 = vmor %vm246_vm14, %vm247_vm3 }
  0x96   :  { %v163_v33 = vmul.f32 0.5, %v162_v52  ;;  %v129_v62 = vsel %vm778_vm15, %v709_v30, %v125_v14  ;;  %v279_v44 = vmul.f32 14.285714, %v209_v26  ;;  %v286_v61 = vmul.f32 %v270_v16, %v549_v2  ;;  %vm897_vm3 = vmor %vm166_vm1, %vm167_vm5 }
  0x97   :  { %v153_v39 = vmul.f32 0.5, %v152_v34  ;;  %v212_v30 = vmul.f32 %v791_v31, %v211_v24  ;;  %v271_v49 = vmul.f32 14.285714, %v129_v62  ;;  %vm157_vm6 = vweird.f32 %v749_v9 }
  0x98   :  { %v164_v35 = vsub.f32 1.5, %v163_v33  ;;  %v57_v40 = vpop.xlane.xlu1 %56  ;;  %vm217_vm8 = vweird.f32 %v791_v31  ;;  %v294_v12 = vmul.f32 %v278_v43, %v544_v1  ;;  %v295_v2 = vmul.f32 %v279_v44, %v565_v7  ;;  %vm878_vm14 = vmor %vm156_vm4, %vm157_vm6 }
  0x99   :  { %v54_v41 = vpop.xlane.xlu0 %53  ;;  %v813_v46 = vpop.eup %478  ;;  %v818_v47 = vmax.f32 %v57_v40, 1e-24  ;;  %v154_v4 = vsub.f32 1.5, %v153_v39  ;;  %v213_v5 = vmul.f32 0.5, %v212_v30  ;;  %v287_v52 = vmul.f32 %v271_v49, %v573_v11  ;;  %vm218_vm5 = vmor %vm216_vm7, %vm217_vm8 }
  0x9a   :  { %v820_v48 = vmax.f32 %v54_v41, 1e-24  ;;  %v251_v50 = vmul.f32 %v813_v46, %v739_v56  ;;  %v66_v55 = vpop.xlane.xlu2 %65  ;;  %v827_v54 = vpop.eup %480  ;;  %v165_v13 = vmul.f32 %v737_v53, %v164_v35  ;;  %vm257_vm10 = vweird.f32 %v813_v46 }
  0x9b   :  { %484 = vrsqrt.f32 %v818_v47  ;;  %v221_v10 = vmul.f32 %v827_v54, %v741_v57  ;;  %v838_v3 = vpop.eup %482  ;;  %v842_v14 = vmax.f32 %v66_v55, 1e-24  ;;  %v214_v15 = vsub.f32 1.5, %v213_v5 }
  0x9c   :  { %v252_v8 = vmul.f32 %v813_v46, %v251_v50  ;;  %486 = vrsqrt.f32 %v820_v48  ;;  %v261_v25 = vmul.f32 %v838_v3, %v783_v23  ;;  %v155_v1 = vmul.f32 %v749_v9, %v154_v4 }
  0x9d   :  { %v222_v60 = vmul.f32 %v827_v54, %v221_v10  ;;  %vm226_vm11 = vweird.f32 %v741_v57  ;;  %vm227_vm12 = vweird.f32 %v827_v54  ;;  %488 = vrsqrt.f32 %v842_v14 }
  0x9e   :  { %v253_v16 = vmul.f32 0.5, %v252_v8  ;;  %v302_v7 = vpack.c.bf16 %v287_v52, %v286_v61  ;;  %v262_v32 = vmul.f32 %v838_v3, %v261_v25  ;;  %vm146_vm15 = vweird.f32 %v818_v47 }
  0x9f   :  { %v223_v63 = vmul.f32 0.5, %v222_v60  ;;  %v306_v33 = vpack.c.bf16 %v295_v2, %v294_v12  ;;  %vm266_vm2 = vweird.f32 %v783_v23  ;;  %vm267_vm9 = vweird.f32 %v838_v3 }
  0xa0   :  { %v254_v26 = vsub.f32 1.5, %v253_v16  ;;  %441 = vmatmul.msk.bf16.vlgmr.msra.gmra.mxu0 %vm45_vm0, %v302_v7  ;;  %v249_v59 = vsel %vm858_vm13, %v699_v17, %v245_v58  ;;  %v282_v24 = vmul.f32 14.285714, %v239_v51  ;;  %v215_v40 = vmul.f32 %v791_v31, %v214_v15 }
  0xa1   :  { %v69_v34 = vpop.xlane.xlu0 %68  ;;  %v864_v62 = vpop.eup %484  ;;  %v224_v41 = vsub.f32 1.5, %v223_v63  ;;  %v263_v43 = vmul.f32 0.5, %v262_v32  ;;  %445 = vmatmul.msk.bf16.vlgmr.msra.gmra.mxu2 %vm45_vm0, %v306_v33  ;;  %v283_v30 = vmul.f32 14.285714, %v249_v59  ;;  %v159_v22 = vsel %vm878_vm14, %v749_v9, %v155_v1  ;;  %vm928_vm14 = vmor %vm226_vm11, %vm227_vm12 }
  0xa2   :  { %v872_v35 = vmax.f32 %v69_v34, 1e-24  ;;  %v141_v44 = vmul.f32 %v864_v62, %v818_v47  ;;  %v886_v17 = vpop.eup %486  ;;  %v255_v51 = vmul.f32 %v813_v46, %v254_v26  ;;  %vm147_vm4 = vweird.f32 %v864_v62 }
  0xa3   :  { %v264_v58 = vsub.f32 1.5, %v263_v43  ;;  %v131_v55 = vmul.f32 %v886_v17, %v820_v48  ;;  %vm176_vm6 = vweird.f32 %v842_v14  ;;  %v906_v61 = vpop.eup %488  ;;  %v225_v9 = vmul.f32 %v827_v54, %v224_v41  ;;  %vm148_vm11 = vmor %vm146_vm15, %vm147_vm4 }
  0xa4   :  { %490 = vrsqrt.f32 %v872_v35  ;;  %v142_v50 = vmul.f32 %v864_v62, %v141_v44  ;;  %vm136_vm13 = vweird.f32 %v820_v48  ;;  %v298_v21 = vmul.f32 %v282_v24, %v539_v0 }
  0xa5   :  { %v299_v4 = vmul.f32 %v283_v30, %v560_v6  ;;  %v169_v5 = vsel %vm897_vm3, %v737_v53, %v165_v13  ;;  %v132_v10 = vmul.f32 %v886_v17, %v131_v55  ;;  %vm137_vm1 = vweird.f32 %v886_v17 }
  0xa6   :  { %v143_v8 = vmul.f32 0.5, %v142_v50  ;;  %v171_v12 = vmul.f32 %v906_v61, %v842_v14  ;;  %v265_v0 = vmul.f32 %v838_v3, %v264_v58  ;;  %v274_v2 = vmul.f32 14.285714, %v159_v22 }
  0xa7   :  { %v308_v6 = vpack.c.bf16 %v299_v4, %v298_v21  ;;  %v275_v52 = vmul.f32 14.285714, %v169_v5  ;;  %v133_v15 = vmul.f32 0.5, %v132_v10  ;;  %v219_v42 = vsel %vm218_vm5, %v791_v31, %v215_v40 }
  0xa8   :  { %v144_v13 = vsub.f32 1.5, %v143_v8  ;;  %v172_v16 = vmul.f32 %v906_v61, %v171_v12  ;;  %v290_v25 = vmul.f32 %v274_v2, %v592_v19  ;;  %v229_v57 = vsel %vm928_vm14, %v827_v54, %v225_v9 }
  0xa9   :  { %447 = vmatmul.msk.bf16.vlgmr.msra.gmra.mxu3 %vm45_vm0, %v308_v6  ;;  %v291_v1 = vmul.f32 %v275_v52, %v587_v18  ;;  %v280_v7 = vmul.f32 14.285714, %v219_v42  ;;  %vm1014_vm7 = vweird.f32 %v739_v56  ;;  %v134_v26 = vsub.f32 1.5, %v133_v15 }
  0xaa   :  { %v491_v60 = vpop.eup %490  ;;  %vm944_vm8 = vmor %vm1014_vm7, %vm257_vm10  ;;  %v145_v31 = vmul.f32 %v864_v62, %v144_v13  ;;  %v173_v63 = vmul.f32 0.5, %v172_v16  ;;  %vm177_vm12 = vweird.f32 %v906_v61  ;;  %v281_v54 = vmul.f32 14.285714, %v229_v57 }
  0xab   :  { %v181_v19 = vmul.f32 %v491_v60, %v872_v35  ;;  %v304_v18 = vpack.c.bf16 %v291_v1, %v290_v25  ;;  %v296_v56 = vmul.f32 %v280_v7, %v597_v20  ;;  %vm268_vm10 = vmor %vm266_vm2, %vm267_vm9  ;;  %v135_v33 = vmul.f32 %v886_v17, %v134_v26 }
  0xac   :  { %v149_v32 = vsel %vm148_vm11, %v864_v62, %v145_v31  ;;  %v174_v34 = vsub.f32 1.5, %v173_v63  ;;  %v297_v47 = vmul.f32 %v281_v54, %v616_v28  ;;  %v259_v20 = vsel %vm944_vm8, %v813_v46, %v255_v51  ;;  %vm138_vm9 = vmor %vm136_vm13, %vm137_vm1 }
  0xad   :  { %v182_v59 = vmul.f32 %v491_v60, %v181_v19  ;;  %v273_v24 = vmul.f32 14.285714, %v149_v32  ;;  %443 = vmatmul.msk.bf16.vlgmr.msra.gmra.mxu1 %vm45_vm0, %v304_v18  ;;  %v269_v39 = vsel %vm268_vm10, %v838_v3, %v265_v0  ;;  %v284_v40 = vmul.f32 14.285714, %v259_v20  ;;  %vm178_vm15 = vmor %vm176_vm6, %vm177_vm12 }
  0xae   :  { %v175_v23 = vmul.f32 %v906_v61, %v174_v34  ;;  %v285_v41 = vmul.f32 14.285714, %v269_v39  ;;  %v307_v28 = vpack.c.bf16 %v297_v47, %v296_v56  ;;  %v139_v46 = vsel %vm138_vm9, %v886_v17, %v135_v33 }
  0xaf   :  { %v183_v62 = vmul.f32 0.5, %v182_v59  ;;  %vm187_vm2 = vweird.f32 %v491_v60  ;;  %v300_v48 = vmul.f32 %v284_v40, %v611_v27  ;;  %v272_v51 = vmul.f32 14.285714, %v139_v46 }
  0xb0   :  { %v179_v3 = vsel %vm178_vm15, %v906_v61, %v175_v23  ;;  %v301_v44 = vmul.f32 %v285_v41, %v621_v29  ;;  %v289_v30 = vmul.f32 %v273_v24, %v635_v36  ;;  %vm186_vm3 = vweird.f32 %v872_v35 }
  0xb1   :  { %v184_v43 = vsub.f32 1.5, %v183_v62  ;;  %446 = vmatmul.msk.bf16.gmra.mxu2 %vm45_vm0, %v307_v28  ;;  %v276_v14 = vmul.f32 14.285714, %v179_v3  ;;  %vm188_vm4 = vmor %vm186_vm3, %vm187_vm2  ;;  %v288_v17 = vmul.f32 %v272_v51, %v640_v37 }
  0xb2   :  { %v309_v50 = vpack.c.bf16 %v301_v44, %v300_v48 }
  0xb3   :  { %v185_v22 = vmul.f32 %v491_v60, %v184_v43  ;;  %v303_v55 = vpack.c.bf16 %v289_v30, %v288_v17  ;;  %v292_v27 = vmul.f32 %v276_v14, %v645_v38 }
  0xb5   :  { %v189_v49 = vsel %vm188_vm4, %v491_v60, %v185_v22  ;;  %442 = vmatmul.msk.bf16.gmra.mxu0 %vm45_vm0, %v303_v55 }
  0xb6   :  { %v277_v58 = vmul.f32 14.285714, %v189_v49 }
  0xb8   :  { %v293_v29 = vmul.f32 %v277_v58, %v659_v45 }
  0xb9   :  { %448 = vmatmul.msk.bf16.gmra.mxu3 %vm45_vm0, %v309_v50 }
  0xba   :  { %v305_v36 = vpack.c.bf16 %v293_v29, %v292_v27 }
  0xbd   :  { %444 = vmatmul.msk.bf16.gmra.mxu1 %vm45_vm0, %v305_v36 }
 0x11d   :  { %v359_v35 = vpop.f32.mrf.mxu0 }
 0x11e   :  { %399 = vst [vmem:[#allocation2] sm:$0xff] %v359_v35 }
 0x124   :  { %v379_v61 = vpop.f32.mrf.mxu2 }
 0x125   :  { %407 = vst [vmem:[#allocation2 + $0x40] sm:$0xff] %v379_v61  ;;  %v361_v37 = vpop.f32.mrf.mxu0 }
 0x126   :  { %400 = vst [vmem:[#allocation2 + $0x8] sm:$0xff] %v361_v37 }
 0x12a   :  { %v369_v9 = vpop.f32.mrf.mxu1 }
 0x12b   :  { %403 = vst [vmem:[#allocation2 + $0x20] sm:$0xff] %v369_v9 }
 0x12c   :  { %v389_v21 = vpop.f32.mrf.mxu3  ;;  %v381_v4 = vpop.f32.mrf.mxu2 }
 0x12d   :  { %411 = vst [vmem:[#allocation2 + $0x60] sm:$0xff] %v389_v21 }
 0x12e   :  { %408 = vst [vmem:[#allocation2 + $0x48] sm:$0xff] %v381_v4 }
 0x132   :  { %v371_v38 = vpop.f32.mrf.mxu1  ;;  %v364_v5 = vpop.f32.mrf.mxu0 }
 0x133   :  { %404 = vst [vmem:[#allocation2 + $0x28] sm:$0xff] %v371_v38 }
 0x134   :  { %v391_v45 = vpop.f32.mrf.mxu3  ;;  %v384_v8 = vpop.f32.mrf.mxu2  ;;  %401 = vst [vmem:[#allocation2 + $0x10] sm:$0xff] %v364_v5 }
 0x135   :  { %412 = vst [vmem:[#allocation2 + $0x68] sm:$0xff] %v391_v45 }
 0x136   :  { %409 = vst [vmem:[#allocation2 + $0x50] sm:$0xff] %v384_v8 }
 0x13a   :  { %v374_v10 = vpop.f32.mrf.mxu1  ;;  %v366_v0 = vpop.f32.mrf.mxu0 }
 0x13b   :  { %405 = vst [vmem:[#allocation2 + $0x30] sm:$0xff] %v374_v10 }
 0x13c   :  { %v394_v12 = vpop.f32.mrf.mxu3  ;;  %v386_v6 = vpop.f32.mrf.mxu2  ;;  %402 = vst [vmem:[#allocation2 + $0x18] sm:$0xff] %v366_v0 }
 0x13d   :  { %413 = vst [vmem:[#allocation2 + $0x70] sm:$0xff] %v394_v12 }
 0x13e   :  { %410 = vst [vmem:[#allocation2 + $0x58] sm:$0xff] %v386_v6 }
 0x142   :  { %v376_v2 = vpop.f32.mrf.mxu1 }
 0x143   :  { %406 = vst [vmem:[#allocation2 + $0x38] sm:$0xff] %v376_v2 }
 0x144   :  { %v396_v52 = vpop.f32.mrf.mxu3 }
 0x145   :  { %414 = vst [vmem:[#allocation2 + $0x78] sm:$0xff] %v396_v52 }
 0x146   :  { %427 = dma.vmem_to_hbm [thread:$0]  %s420_s16, 2048, %s422_s19, [#allocation3], %s519_s20, %s519_s20, %s520_s21  }
 0x147   :  { %516 = dma.done.wait [#allocation3], 2048  }
 0x148   :  { %517 = vsyncadd [#allocation3], 4294965248 }
 0x149   :  { %432 = vsyncpa [#allocation3], 1 }

// kernel: tpu_custom_call.1
= control target key start
LH: loop header
LB: loop body
LE: loop exit
PB: predicated region body
PF: predicated region fallthrough
CT: control target
= control target key end

     0   :  { %vm45_vm0 = vcmask 261120   ;;  %s993_s0 = inlined_call_operand.vmem [shape: f32[128,32], index: 0, kind: input, shape index: {}]   ;;  %s994_s1 = inlined_call_operand.vmem [shape: bf16[32,128], index: 1, kind: input, shape index: {}]   ;;  %s995_s2 = inlined_call_operand.hbm [shape: f32[128,128], index: 2, kind: output, shape index: {}]  }
   0x1   :  { %v539_v0 = vld [vmem:[%s993_s0 + $0x60] sm:$0xff]  ;;  %v560_v6 = vld [vmem:[%s993_s0 + $0x68] sm:$0xff] }
   0x2   :  { %v544_v1 = vld [vmem:[%s993_s0 + $0x40] sm:$0xff]  ;;  %v41_v3 = vmul.f32 %v539_v0, %v539_v0  ;;  %v565_v7 = vld [vmem:[%s993_s0 + $0x48] sm:$0xff]  ;;  %v42_v12 = vmul.f32 %v560_v6, %v560_v6 }
   0x3   :  { %v549_v2 = vld [vmem:[%s993_s0] sm:$0xff]  ;;  %v37_v4 = vmul.f32 %v544_v1, %v544_v1  ;;  %v573_v11 = vld [vmem:[%s993_s0 + $0x8] sm:$0xff]  ;;  %v38_v13 = vmul.f32 %v565_v7, %v565_v7 }
   0x4   :  { %v29_v5 = vmul.f32 %v549_v2, %v549_v2  ;;  %v82_v8 = vsel %vm45_vm0, %v41_v3, 0.0 }
   0x5   :  { %v70_v9 = vsel %vm45_vm0, %v37_v4, 0.0  ;;  %83 = vadd.xlane.f32.xlu1 %v82_v8 }
   0x6   :  { %v46_v10 = vsel %vm45_vm0, %v29_v5, 0.0  ;;  %71 = vadd.xlane.f32.xlu0 %v70_v9 }
   0x7   :  { %47 = vadd.xlane.f32.xlu2 %v46_v10 }
   0x8   :  { %7 = vsyncpa [#allocation3], 0  ;;  %v30_v14 = vmul.f32 %v573_v11, %v573_v11  ;;  %v85_v15 = vsel %vm45_vm0, %v42_v12, 0.0  ;;  %v73_v16 = vsel %vm45_vm0, %v38_v13, 0.0  ;;  %v587_v18 = vld [vmem:[%s993_s0 + $0x28] sm:$0xff]  ;;  %v592_v19 = vld [vmem:[%s993_s0 + $0x20] sm:$0xff] }
   0x9   :  { %v597_v20 = vld [vmem:[%s993_s0 + $0x50] sm:$0xff]  ;;  %v34_v21 = vmul.f32 %v587_v18, %v587_v18  ;;  %v33_v22 = vmul.f32 %v592_v19, %v592_v19  ;;  %v616_v28 = vld [vmem:[%s993_s0 + $0x58] sm:$0xff]  ;;  %v450_v48 = vld [vmem:[%s994_s1 + $0x8] sm:$0xff]  ;;  %s421_s19 = sshll.u32 %s995_s2, 4  ;;  %s519_s20 = smov 128   ;;  %s422_s19 = int_to_ptr.hbm [resolvable:$true] %s421_s19 }
   0xa   :  { %v49_v17 = vsel %vm45_vm0, %v30_v14, 0.0  ;;  %v39_v23 = vmul.f32 %v597_v20, %v597_v20  ;;  %v611_v27 = vld [vmem:[%s993_s0 + $0x70] sm:$0xff]  ;;  %v621_v29 = vld [vmem:[%s993_s0 + $0x78] sm:$0xff]  ;;  %v40_v31 = vmul.f32 %v616_v28, %v616_v28  ;;  %356 = vmatpush.bf16.msra.mxu0 %v450_v48  ;;  %452 = vmatpush.bf16.msra.mxu2 %v450_v48  ;;  %v449_v55 = vld [vmem:[%s994_s1] sm:$0xff]  ;;  %s518_s1 = smov [#allocation2]   ;;  %s520_s21 = smov 8  }
   0xb   :  { %v61_v24 = vsel %vm45_vm0, %v34_v21, 0.0  ;;  %v58_v25 = vsel %vm45_vm0, %v33_v22, 0.0  ;;  %v43_v30 = vmul.f32 %v611_v27, %v611_v27  ;;  %v44_v32 = vmul.f32 %v621_v29, %v621_v29  ;;  %v635_v36 = vld [vmem:[%s993_s0 + $0x18] sm:$0xff]  ;;  %v640_v37 = vld [vmem:[%s993_s0 + $0x10] sm:$0xff]  ;;  %453 = vmatpush.bf16.msra.mxu3 %v450_v48  ;;  %451 = vmatpush.bf16.msra.mxu1 %v450_v48  ;;  %s419_s16 = sshll.u32 %s518_s1, 4  ;;  %s420_s16 = int_to_ptr.vmem [resolvable:$true] %s419_s16 }
   0xc   :  { %v76_v26 = vsel %vm45_vm0, %v39_v23, 0.0  ;;  %v79_v34 = vsel %vm45_vm0, %v40_v31, 0.0  ;;  %v645_v38 = vld [vmem:[%s993_s0 + $0x30] sm:$0xff]  ;;  %v32_v39 = vmul.f32 %v635_v36, %v635_v36  ;;  %v31_v40 = vmul.f32 %v640_v37, %v640_v37  ;;  %v659_v45 = vld [vmem:[%s993_s0 + $0x38] sm:$0xff] }
   0xd   :  { %86 = vadd.xlane.f32.xlu1 %v85_v15  ;;  %v88_v33 = vsel %vm45_vm0, %v43_v30, 0.0  ;;  %v91_v35 = vsel %vm45_vm0, %v44_v32, 0.0  ;;  %v35_v41 = vmul.f32 %v645_v38, %v645_v38  ;;  %v36_v46 = vmul.f32 %v659_v45, %v659_v45 }
   0xe   :  { %74 = vadd.xlane.f32.xlu0 %v73_v16  ;;  %v55_v42 = vsel %vm45_vm0, %v32_v39, 0.0  ;;  %v52_v43 = vsel %vm45_vm0, %v31_v40, 0.0  ;;  %357 = vmatpush.bf16.msra.mxu0 %v449_v55 }
   0xf   :  { %50 = vadd.xlane.f32.xlu2 %v49_v17  ;;  %v64_v44 = vsel %vm45_vm0, %v35_v41, 0.0  ;;  %v67_v47 = vsel %vm45_vm0, %v36_v46, 0.0  ;;  %455 = vmatpush.bf16.msra.mxu2 %v449_v55 }
  0x10   :  { %456 = vmatpush.bf16.msra.mxu3 %v449_v55  ;;  %454 = vmatpush.bf16.msra.mxu1 %v449_v55 }
  0x15   :  { %62 = vadd.xlane.f32.xlu1 %v61_v24 }
  0x16   :  { %59 = vadd.xlane.f32.xlu0 %v58_v25 }
  0x17   :  { %77 = vadd.xlane.f32.xlu2 %v76_v26 }
  0x1d   :  { %89 = vadd.xlane.f32.xlu1 %v88_v33 }
  0x1e   :  { %80 = vadd.xlane.f32.xlu0 %v79_v34 }
  0x1f   :  { %92 = vadd.xlane.f32.xlu2 %v91_v35 }
  0x25   :  { %56 = vadd.xlane.f32.xlu1 %v55_v42 }
  0x26   :  { %53 = vadd.xlane.f32.xlu0 %v52_v43 }
  0x27   :  { %65 = vadd.xlane.f32.xlu2 %v64_v44 }
  0x2e   :  { %68 = vadd.xlane.f32.xlu0 %v67_v47 }
  0x78   :  { %v84_v49 = vpop.xlane.xlu1 %83 }
  0x79   :  { %v72_v50 = vpop.xlane.xlu0 %71  ;;  %v667_v51 = vmax.f32 %v84_v49, 1e-24 }
  0x7a   :  { %v669_v52 = vmax.f32 %v72_v50, 1e-24  ;;  %v48_v53 = vpop.xlane.xlu2 %47 }
  0x7b   :  { %v94_v54 = vmax.f32 %v48_v53, 1e-24  ;;  %460 = vrsqrt.f32 %v667_v51  ;;  %vm236_vm1 = vweird.f32 %v667_v51 }
  0x7c   :  { %462 = vrsqrt.f32 %v669_v52  ;;  %vm196_vm2 = vweird.f32 %v669_v52 }
  0x7d   :  { %464 = vrsqrt.f32 %v94_v54  ;;  %vm116_vm3 = vweird.f32 %v94_v54 }
  0x80   :  { %v87_v56 = vpop.xlane.xlu1 %86 }
  0x81   :  { %v75_v57 = vpop.xlane.xlu0 %74  ;;  %v676_v58 = vpop.eup %460  ;;  %v678_v59 = vmax.f32 %v87_v56, 1e-24 }
  0x82   :  { %v680_v60 = vmax.f32 %v75_v57, 1e-24  ;;  %v51_v61 = vpop.xlane.xlu2 %50  ;;  %v682_v62 = vpop.eup %462  ;;  %v231_v4 = vmul.f32 %v676_v58, %v667_v51  ;;  %vm237_vm5 = vweird.f32 %v676_v58 }
  0x83   :  { %v684_v63 = vmax.f32 %v51_v61, 1e-24  ;;  %v686_v3 = vpop.eup %464  ;;  %v191_v5 = vmul.f32 %v682_v62, %v669_v52  ;;  %466 = vrsqrt.f32 %v678_v59  ;;  %vm197_vm6 = vweird.f32 %v682_v62 }
  0x84   :  { %v111_v8 = vmul.f32 %v686_v3, %v94_v54  ;;  %468 = vrsqrt.f32 %v680_v60  ;;  %v232_v12 = vmul.f32 %v676_v58, %v231_v4  ;;  %vm117_vm4 = vweird.f32 %v686_v3  ;;  %vm758_vm11 = vmor %vm196_vm2, %vm197_vm6 }
  0x85   :  { %v192_v9 = vmul.f32 %v682_v62, %v191_v5  ;;  %470 = vrsqrt.f32 %v684_v63  ;;  %vm126_vm7 = vweird.f32 %v684_v63  ;;  %vm731_vm8 = vmor %vm116_vm3, %vm117_vm4  ;;  %vm206_vm12 = vweird.f32 %v680_v60 }
  0x86   :  { %v112_v10 = vmul.f32 %v686_v3, %v111_v8  ;;  %v233_v31 = vmul.f32 0.5, %v232_v12  ;;  %vm246_vm14 = vweird.f32 %v678_v59  ;;  %vm797_vm2 = vmor %vm236_vm1, %vm237_vm5 }
  0x87   :  { %v193_v13 = vmul.f32 0.5, %v192_v9 }
  0x88   :  { %v113_v14 = vmul.f32 0.5, %v112_v10  ;;  %v63_v15 = vpop.xlane.xlu1 %62  ;;  %v234_v43 = vsub.f32 1.5, %v233_v31 }
  0x89   :  { %v60_v16 = vpop.xlane.xlu0 %59  ;;  %v699_v17 = vpop.eup %466  ;;  %v701_v21 = vmax.f32 %v63_v15, 1e-24  ;;  %v194_v33 = vsub.f32 1.5, %v193_v13 }
  0x8a   :  { %v703_v22 = vmax.f32 %v60_v16, 1e-24  ;;  %v78_v23 = vpop.xlane.xlu2 %77  ;;  %v705_v24 = vpop.eup %468  ;;  %v114_v25 = vsub.f32 1.5, %v113_v14  ;;  %v241_v26 = vmul.f32 %v699_v17, %v678_v59  ;;  %v752_v10 = vmul.f32 %v676_v58, %v234_v43 }
  0x8b   :  { %v709_v30 = vpop.eup %470  ;;  %v201_v32 = vmul.f32 %v705_v24, %v680_v60  ;;  %472 = vrsqrt.f32 %v701_v21  ;;  %v725_v42 = vmax.f32 %v78_v23, 1e-24  ;;  %v195_v46 = vmul.f32 %v682_v62, %v194_v33 }
  0x8c   :  { %v121_v34 = vmul.f32 %v709_v30, %v684_v63  ;;  %v115_v35 = vmul.f32 %v686_v3, %v114_v25  ;;  %474 = vrsqrt.f32 %v703_v22  ;;  %v242_v40 = vmul.f32 %v699_v17, %v241_v26 }
  0x8d   :  { %v202_v39 = vmul.f32 %v705_v24, %v201_v32  ;;  %vm207_vm9 = vweird.f32 %v705_v24  ;;  %476 = vrsqrt.f32 %v725_v42  ;;  %vm127_vm10 = vweird.f32 %v709_v30 }
  0x8e   :  { %v122_v41 = vmul.f32 %v709_v30, %v121_v34  ;;  %v119_v54 = vsel %vm731_vm8, %v686_v3, %v115_v35  ;;  %v243_v4 = vmul.f32 0.5, %v242_v40  ;;  %vm767_vm13 = vmor %vm206_vm12, %vm207_vm9  ;;  %v199_v25 = vsel %vm758_vm11, %v682_v62, %v195_v46 }
  0x8f   :  { %v203_v44 = vmul.f32 0.5, %v202_v39  ;;  %v270_v16 = vmul.f32 14.285714, %v119_v54  ;;  %vm778_vm15 = vmor %vm126_vm7, %vm127_vm10  ;;  %vm247_vm3 = vweird.f32 %v699_v17  ;;  %v239_v51 = vsel %vm797_vm2, %v676_v58, %v752_v10 }
  0x90   :  { %v123_v48 = vmul.f32 0.5, %v122_v41  ;;  %v90_v49 = vpop.xlane.xlu1 %89  ;;  %v244_v32 = vsub.f32 1.5, %v243_v4  ;;  %v278_v43 = vmul.f32 14.285714, %v199_v25  ;;  %vm166_vm1 = vweird.f32 %v701_v21 }
  0x91   :  { %v81_v50 = vpop.xlane.xlu0 %80  ;;  %v737_v53 = vpop.eup %472  ;;  %v204_v55 = vsub.f32 1.5, %v203_v44  ;;  %v739_v56 = vmax.f32 %v90_v49, 1e-24  ;;  %vm156_vm4 = vweird.f32 %v703_v22  ;;  %vm216_vm7 = vweird.f32 %v725_v42 }
  0x92   :  { %v741_v57 = vmax.f32 %v81_v50, 1e-24  ;;  %v93_v61 = vpop.xlane.xlu2 %92  ;;  %v124_v5 = vsub.f32 1.5, %v123_v48  ;;  %v161_v8 = vmul.f32 %v737_v53, %v701_v21  ;;  %v749_v9 = vpop.eup %474  ;;  %v245_v58 = vmul.f32 %v699_v17, %v244_v32 }
  0x93   :  { %v205_v3 = vmul.f32 %v705_v24, %v204_v55  ;;  %478 = vrsqrt.f32 %v739_v56  ;;  %v151_v15 = vmul.f32 %v749_v9, %v703_v22  ;;  %v783_v23 = vmax.f32 %v93_v61, 1e-24  ;;  %v791_v31 = vpop.eup %476 }
  0x94   :  { %v125_v14 = vmul.f32 %v709_v30, %v124_v5  ;;  %v162_v52 = vmul.f32 %v737_v53, %v161_v8  ;;  %480 = vrsqrt.f32 %v741_v57  ;;  %vm167_vm5 = vweird.f32 %v737_v53 }
  0x95   :  { %v209_v26 = vsel %vm767_vm13, %v705_v24, %v205_v3  ;;  %v152_v34 = vmul.f32 %v749_v9, %v151_v15  ;;  %v211_v24 = vmul.f32 %v791_v31, %v725_v42  ;;  %482 = vrsqrt.f32 %v783_v23  ;;  %vm858_vm13 = vmor %vm246_vm14, %vm247_vm3 }
  0x96   :  { %v163_v33 = vmul.f32 0.5, %v162_v52  ;;  %v129_v62 = vsel %vm778_vm15, %v709_v30, %v125_v14  ;;  %v279_v44 = vmul.f32 14.285714, %v209_v26  ;;  %v286_v61 = vmul.f32 %v270_v16, %v549_v2  ;;  %vm897_vm3 = vmor %vm166_vm1, %vm167_vm5 }
  0x97   :  { %v153_v39 = vmul.f32 0.5, %v152_v34  ;;  %v212_v30 = vmul.f32 %v791_v31, %v211_v24  ;;  %v271_v49 = vmul.f32 14.285714, %v129_v62  ;;  %vm157_vm6 = vweird.f32 %v749_v9 }
  0x98   :  { %v164_v35 = vsub.f32 1.5, %v163_v33  ;;  %v57_v40 = vpop.xlane.xlu1 %56  ;;  %vm217_vm8 = vweird.f32 %v791_v31  ;;  %v294_v12 = vmul.f32 %v278_v43, %v544_v1  ;;  %v295_v2 = vmul.f32 %v279_v44, %v565_v7  ;;  %vm878_vm14 = vmor %vm156_vm4, %vm157_vm6 }
  0x99   :  { %v54_v41 = vpop.xlane.xlu0 %53  ;;  %v813_v46 = vpop.eup %478  ;;  %v818_v47 = vmax.f32 %v57_v40, 1e-24  ;;  %v154_v4 = vsub.f32 1.5, %v153_v39  ;;  %v213_v5 = vmul.f32 0.5, %v212_v30  ;;  %v287_v52 = vmul.f32 %v271_v49, %v573_v11  ;;  %vm218_vm5 = vmor %vm216_vm7, %vm217_vm8 }
  0x9a   :  { %v820_v48 = vmax.f32 %v54_v41, 1e-24  ;;  %v251_v50 = vmul.f32 %v813_v46, %v739_v56  ;;  %v66_v55 = vpop.xlane.xlu2 %65  ;;  %v827_v54 = vpop.eup %480  ;;  %v165_v13 = vmul.f32 %v737_v53, %v164_v35  ;;  %vm257_vm10 = vweird.f32 %v813_v46 }
  0x9b   :  { %484 = vrsqrt.f32 %v818_v47  ;;  %v221_v10 = vmul.f32 %v827_v54, %v741_v57  ;;  %v838_v3 = vpop.eup %482  ;;  %v842_v14 = vmax.f32 %v66_v55, 1e-24  ;;  %v214_v15 = vsub.f32 1.5, %v213_v5 }
  0x9c   :  { %v252_v8 = vmul.f32 %v813_v46, %v251_v50  ;;  %486 = vrsqrt.f32 %v820_v48  ;;  %v261_v25 = vmul.f32 %v838_v3, %v783_v23  ;;  %v155_v1 = vmul.f32 %v749_v9, %v154_v4 }
  0x9d   :  { %v222_v60 = vmul.f32 %v827_v54, %v221_v10  ;;  %vm226_vm11 = vweird.f32 %v741_v57  ;;  %vm227_vm12 = vweird.f32 %v827_v54  ;;  %488 = vrsqrt.f32 %v842_v14 }
  0x9e   :  { %v253_v16 = vmul.f32 0.5, %v252_v8  ;;  %v302_v7 = vpack.c.bf16 %v287_v52, %v286_v61  ;;  %v262_v32 = vmul.f32 %v838_v3, %v261_v25  ;;  %vm146_vm15 = vweird.f32 %v818_v47 }
  0x9f   :  { %v223_v63 = vmul.f32 0.5, %v222_v60  ;;  %v306_v33 = vpack.c.bf16 %v295_v2, %v294_v12  ;;  %vm266_vm2 = vweird.f32 %v783_v23  ;;  %vm267_vm9 = vweird.f32 %v838_v3 }
  0xa0   :  { %v254_v26 = vsub.f32 1.5, %v253_v16  ;;  %441 = vmatmul.msk.bf16.vlgmr.msra.gmra.mxu0 %vm45_vm0, %v302_v7  ;;  %v249_v59 = vsel %vm858_vm13, %v699_v17, %v245_v58  ;;  %v282_v24 = vmul.f32 14.285714, %v239_v51  ;;  %v215_v40 = vmul.f32 %v791_v31, %v214_v15 }
  0xa1   :  { %v69_v34 = vpop.xlane.xlu0 %68  ;;  %v864_v62 = vpop.eup %484  ;;  %v224_v41 = vsub.f32 1.5, %v223_v63  ;;  %v263_v43 = vmul.f32 0.5, %v262_v32  ;;  %445 = vmatmul.msk.bf16.vlgmr.msra.gmra.mxu2 %vm45_vm0, %v306_v33  ;;  %v283_v30 = vmul.f32 14.285714, %v249_v59  ;;  %v159_v22 = vsel %vm878_vm14, %v749_v9, %v155_v1  ;;  %vm928_vm14 = vmor %vm226_vm11, %vm227_vm12 }
  0xa2   :  { %v872_v35 = vmax.f32 %v69_v34, 1e-24  ;;  %v141_v44 = vmul.f32 %v864_v62, %v818_v47  ;;  %v886_v17 = vpop.eup %486  ;;  %v255_v51 = vmul.f32 %v813_v46, %v254_v26  ;;  %vm147_vm4 = vweird.f32 %v864_v62 }
  0xa3   :  { %v264_v58 = vsub.f32 1.5, %v263_v43  ;;  %v131_v55 = vmul.f32 %v886_v17, %v820_v48  ;;  %vm176_vm6 = vweird.f32 %v842_v14  ;;  %v906_v61 = vpop.eup %488  ;;  %v225_v9 = vmul.f32 %v827_v54, %v224_v41  ;;  %vm148_vm11 = vmor %vm146_vm15, %vm147_vm4 }
  0xa4   :  { %490 = vrsqrt.f32 %v872_v35  ;;  %v142_v50 = vmul.f32 %v864_v62, %v141_v44  ;;  %vm136_vm13 = vweird.f32 %v820_v48  ;;  %v298_v21 = vmul.f32 %v282_v24, %v539_v0 }
  0xa5   :  { %v299_v4 = vmul.f32 %v283_v30, %v560_v6  ;;  %v169_v5 = vsel %vm897_vm3, %v737_v53, %v165_v13  ;;  %v132_v10 = vmul.f32 %v886_v17, %v131_v55  ;;  %vm137_vm1 = vweird.f32 %v886_v17 }
  0xa6   :  { %v143_v8 = vmul.f32 0.5, %v142_v50  ;;  %v171_v12 = vmul.f32 %v906_v61, %v842_v14  ;;  %v265_v0 = vmul.f32 %v838_v3, %v264_v58  ;;  %v274_v2 = vmul.f32 14.285714, %v159_v22 }
  0xa7   :  { %v308_v6 = vpack.c.bf16 %v299_v4, %v298_v21  ;;  %v275_v52 = vmul.f32 14.285714, %v169_v5  ;;  %v133_v15 = vmul.f32 0.5, %v132_v10  ;;  %v219_v42 = vsel %vm218_vm5, %v791_v31, %v215_v40 }
  0xa8   :  { %v144_v13 = vsub.f32 1.5, %v143_v8  ;;  %v172_v16 = vmul.f32 %v906_v61, %v171_v12  ;;  %v290_v25 = vmul.f32 %v274_v2, %v592_v19  ;;  %v229_v57 = vsel %vm928_vm14, %v827_v54, %v225_v9 }
  0xa9   :  { %447 = vmatmul.msk.bf16.vlgmr.msra.gmra.mxu3 %vm45_vm0, %v308_v6  ;;  %v291_v1 = vmul.f32 %v275_v52, %v587_v18  ;;  %v280_v7 = vmul.f32 14.285714, %v219_v42  ;;  %vm1014_vm7 = vweird.f32 %v739_v56  ;;  %v134_v26 = vsub.f32 1.5, %v133_v15 }
  0xaa   :  { %v491_v60 = vpop.eup %490  ;;  %vm944_vm8 = vmor %vm1014_vm7, %vm257_vm10  ;;  %v145_v31 = vmul.f32 %v864_v62, %v144_v13  ;;  %v173_v63 = vmul.f32 0.5, %v172_v16  ;;  %vm177_vm12 = vweird.f32 %v906_v61  ;;  %v281_v54 = vmul.f32 14.285714, %v229_v57 }
  0xab   :  { %v181_v19 = vmul.f32 %v491_v60, %v872_v35  ;;  %v304_v18 = vpack.c.bf16 %v291_v1, %v290_v25  ;;  %v296_v56 = vmul.f32 %v280_v7, %v597_v20  ;;  %vm268_vm10 = vmor %vm266_vm2, %vm267_vm9  ;;  %v135_v33 = vmul.f32 %v886_v17, %v134_v26 }
  0xac   :  { %v149_v32 = vsel %vm148_vm11, %v864_v62, %v145_v31  ;;  %v174_v34 = vsub.f32 1.5, %v173_v63  ;;  %v297_v47 = vmul.f32 %v281_v54, %v616_v28  ;;  %v259_v20 = vsel %vm944_vm8, %v813_v46, %v255_v51  ;;  %vm138_vm9 = vmor %vm136_vm13, %vm137_vm1 }
  0xad   :  { %v182_v59 = vmul.f32 %v491_v60, %v181_v19  ;;  %v273_v24 = vmul.f32 14.285714, %v149_v32  ;;  %443 = vmatmul.msk.bf16.vlgmr.msra.gmra.mxu1 %vm45_vm0, %v304_v18  ;;  %v269_v39 = vsel %vm268_vm10, %v838_v3, %v265_v0  ;;  %v284_v40 = vmul.f32 14.285714, %v259_v20  ;;  %vm178_vm15 = vmor %vm176_vm6, %vm177_vm12 }
  0xae   :  { %v175_v23 = vmul.f32 %v906_v61, %v174_v34  ;;  %v285_v41 = vmul.f32 14.285714, %v269_v39  ;;  %v307_v28 = vpack.c.bf16 %v297_v47, %v296_v56  ;;  %v139_v46 = vsel %vm138_vm9, %v886_v17, %v135_v33 }
  0xaf   :  { %v183_v62 = vmul.f32 0.5, %v182_v59  ;;  %vm187_vm2 = vweird.f32 %v491_v60  ;;  %v300_v48 = vmul.f32 %v284_v40, %v611_v27  ;;  %v272_v51 = vmul.f32 14.285714, %v139_v46 }
  0xb0   :  { %v179_v3 = vsel %vm178_vm15, %v906_v61, %v175_v23  ;;  %v301_v44 = vmul.f32 %v285_v41, %v621_v29  ;;  %v289_v30 = vmul.f32 %v273_v24, %v635_v36  ;;  %vm186_vm3 = vweird.f32 %v872_v35 }
  0xb1   :  { %v184_v43 = vsub.f32 1.5, %v183_v62  ;;  %446 = vmatmul.msk.bf16.gmra.mxu2 %vm45_vm0, %v307_v28  ;;  %v276_v14 = vmul.f32 14.285714, %v179_v3  ;;  %vm188_vm4 = vmor %vm186_vm3, %vm187_vm2  ;;  %v288_v17 = vmul.f32 %v272_v51, %v640_v37 }
  0xb2   :  { %v309_v50 = vpack.c.bf16 %v301_v44, %v300_v48 }
  0xb3   :  { %v185_v22 = vmul.f32 %v491_v60, %v184_v43  ;;  %v303_v55 = vpack.c.bf16 %v289_v30, %v288_v17  ;;  %v292_v27 = vmul.f32 %v276_v14, %v645_v38 }
  0xb5   :  { %v189_v49 = vsel %vm188_vm4, %v491_v60, %v185_v22  ;;  %442 = vmatmul.msk.bf16.gmra.mxu0 %vm45_vm0, %v303_v55 }
  0xb6   :  { %v277_v58 = vmul.f32 14.285714, %v189_v49 }
  0xb8   :  { %v293_v29 = vmul.f32 %v277_v58, %v659_v45 }
  0xb9   :  { %448 = vmatmul.msk.bf16.gmra.mxu3 %vm45_vm0, %v309_v50 }
  0xba   :  { %v305_v36 = vpack.c.bf16 %v293_v29, %v292_v27 }
  0xbd   :  { %444 = vmatmul.msk.bf16.gmra.mxu1 %vm45_vm0, %v305_v36 }
 0x11d   :  { %v359_v35 = vpop.f32.mrf.mxu0 }
 0x11e   :  { %399 = vst [vmem:[#allocation2] sm:$0xff] %v359_v35 }
 0x124   :  { %v379_v61 = vpop.f32.mrf.mxu2 }
 0x125   :  { %407 = vst [vmem:[#allocation2 + $0x40] sm:$0xff] %v379_v61  ;;  %v361_v37 = vpop.f32.mrf.mxu0 }
 0x126   :  { %400 = vst [vmem:[#allocation2 + $0x8] sm:$0xff] %v361_v37 }
 0x12a   :  { %v369_v9 = vpop.f32.mrf.mxu1 }
 0x12b   :  { %403 = vst [vmem:[#allocation2 + $0x20] sm:$0xff] %v369_v9 }
 0x12c   :  { %v389_v21 = vpop.f32.mrf.mxu3  ;;  %v381_v4 = vpop.f32.mrf.mxu2 }
 0x12d   :  { %411 = vst [vmem:[#allocation2 + $0x60] sm:$0xff] %v389_v21 }
 0x12e   :  { %408 = vst [vmem:[#allocation2 + $0x48] sm:$0xff] %v381_v4 }
 0x132   :  { %v371_v38 = vpop.f32.mrf.mxu1  ;;  %v364_v5 = vpop.f32.mrf.mxu0 }
 0x133   :  { %404 = vst [vmem:[#allocation2 + $0x28] sm:$0xff] %v371_v38 }
 0x134   :  { %v391_v45 = vpop.f32.mrf.mxu3  ;;  %v384_v8 = vpop.f32.mrf.mxu2  ;;  %401 = vst [vmem:[#allocation2 + $0x10] sm:$0xff] %v364_v5 }
 0x135   :  { %412 = vst [vmem:[#allocation2 + $0x68] sm:$0xff] %v391_v45 }
 0x136   :  { %409 = vst [vmem:[#allocation2 + $0x50] sm:$0xff] %v384_v8 }
 0x13a   :  { %v374_v10 = vpop.f32.mrf.mxu1  ;;  %v366_v0 = vpop.f32.mrf.mxu0 }
 0x13b   :  { %405 = vst [vmem:[#allocation2 + $0x30] sm:$0xff] %v374_v10 }
 0x13c   :  { %v394_v12 = vpop.f32.mrf.mxu3  ;;  %v386_v6 = vpop.f32.mrf.mxu2  ;;  %402 = vst [vmem:[#allocation2 + $0x18] sm:$0xff] %v366_v0 }
 0x13d   :  { %413 = vst [vmem:[#allocation2 + $0x70] sm:$0xff] %v394_v12 }
 0x13e   :  { %410 = vst [vmem:[#allocation2 + $0x58] sm:$0xff] %v386_v6 }
 0x142   :  { %v376_v2 = vpop.f32.mrf.mxu1 }
 0x143   :  { %406 = vst [vmem:[#allocation2 + $0x38] sm:$0xff] %v376_v2 }
 0x144   :  { %v396_v52 = vpop.f32.mrf.mxu3 }
 0x145   :  { %414 = vst [vmem:[#allocation2 + $0x78] sm:$0xff] %v396_v52 }
 0x146   :  { %427 = dma.vmem_to_hbm [thread:$0]  %s420_s16, 2048, %s422_s19, [#allocation3], %s519_s20, %s519_s20, %s520_s21  }
 0x147   :  { %516 = dma.done.wait [#allocation3], 2048  }
 0x148   :  { %517 = vsyncadd [#allocation3], 4294965248 }
 0x149   :  { %432 = vsyncpa [#allocation3], 1 }

</bundles_post_ra>
